<compile_context>
chip_gen: v6e
topology: v6e:2x2x1
jax: 0.10.0
libtpu: 0.0.40
codegen_flags: <defaults>
</compile_context>

<pallas_src>
import jax
import jax.numpy as jnp
from jax.experimental import pallas as pl
from jax.experimental.pallas import tpu as pltpu

_LANES = 128
_VMEM_LIMIT_BYTES = 48 * 1024 * 1024


def _dsigmoid_kernel(x_ref, o_ref):
    x = x_ref[...].astype(jnp.float32)
    s = jax.nn.sigmoid(10.0 * x)
    o_ref[...] = (10.0 * s * (1.0 - s)).astype(o_ref.dtype)


def _dsigmoid_jnp(x):
    # Fused XLA elementwise fallback / reference: one HBM read + one write.
    s = jax.nn.sigmoid(10.0 * x.astype(jnp.float32))
    return (10.0 * s * (1.0 - s)).astype(x.dtype)


def _round_up(a: int, b: int) -> int:
    return ((a + b - 1) // b) * b


def _sublanes_for(dtype) -> int:
    # Native packed tiles: (8,128) for 32-bit, (16,128) for 16-bit, (32,128)
    # for 8-bit. Sub-32-bit dtypes pack along sublanes.
    itemsize = jnp.dtype(dtype).itemsize
    return max(8, 32 // max(itemsize, 1))


def dsigmoid(x: jax.Array, *, tile_rows: int = 8192,
             donate_input: bool = False) -> jax.Array:
    """Elementwise DSigmoid y = 10*s*(1-s), s = sigmoid(10*x), via Pallas."""
    orig_shape = x.shape
    n = x.size
    if n == 0:
        return x

    # The Pallas path needs a copy-free lane-dense (rows, 128) view. Shapes
    # whose element count is not a multiple of 128 take the fused-XLA fallback
    # (same bytes moved as the kernel; strictly cheaper than pad+slice passes).
    # TODO(synk): handle the <128-element ragged tail inside the kernel with a
    # manual masked DMA so the Pallas path covers every element count.
    if n % _LANES != 0:
        return _dsigmoid_jnp(x)

    rows = n // _LANES
    x2d = jnp.reshape(x, (rows, _LANES))  # contiguous reshape -> bitcast, no copy

    sublanes = _sublanes_for(x.dtype)
    # block_rows: multiple of the native sublane tile, <= tile_rows, and capped
    # at ~half the rows so the "parallel" grid axis has >= 2 steps and both
    # v7x TensorCores get work. Ragged trailing row-blocks are write-masked.
    half_rows = _round_up(pl.cdiv(rows, 2), sublanes)
    block_rows = max(sublanes, min(_round_up(tile_rows, sublanes), half_rows))
    grid = (pl.cdiv(rows, block_rows),)

    itemsize = jnp.dtype(x.dtype).itemsize
    cost = pl.CostEstimate(
        flops=6 * n, transcendentals=n, bytes_accessed=2 * n * itemsize)

    out2d = pl.pallas_call(
        _dsigmoid_kernel,
        out_shape=jax.ShapeDtypeStruct((rows, _LANES), x.dtype),
        grid_spec=pltpu.PrefetchScalarGridSpec(
            num_scalar_prefetch=0,
            grid=grid,
            in_specs=[pl.BlockSpec((block_rows, _LANES), lambda i: (i, 0))],
            out_specs=pl.BlockSpec((block_rows, _LANES), lambda i: (i, 0)),
        ),
        compiler_params=pltpu.CompilerParams(
            dimension_semantics=("parallel",),
            vmem_limit_bytes=_VMEM_LIMIT_BYTES,
        ),
        cost_estimate=cost,
        # Only alias when the caller actually donates x; otherwise XLA would
        # insert a defensive copy (an extra HBM pass).
        input_output_aliases=({0: 0} if donate_input else {}),
    )(x2d)

    return out2d.reshape(orig_shape)


if __name__ == "__main__":
    key = jax.random.PRNGKey(0)

    # Small NCHW-like input consistent with conv-style usage in the source file.
    x = jax.random.normal(key, (2, 4, 16, 16), dtype=jnp.float32)
    y = dsigmoid(x)
    jax.block_until_ready(y)
    y_ref = _dsigmoid_jnp(x)
    assert y.shape == x.shape and y.dtype == x.dtype
    assert jnp.allclose(y, y_ref, atol=1e-5, rtol=1e-5), "mismatch vs reference"

    # Ragged trailing row-block path (rows = 15, block_rows = 8, grid = 2).
    x_rag = jax.random.normal(jax.random.PRNGKey(1), (3, 5, 128), dtype=jnp.float32)
    y_rag = dsigmoid(x_rag)
    jax.block_until_ready(y_rag)
    assert y_rag.shape == x_rag.shape and y_rag.dtype == x_rag.dtype
    assert jnp.allclose(y_rag, _dsigmoid_jnp(x_rag), atol=1e-5, rtol=1e-5), \
        "mismatch vs reference (ragged rows path)"

    # bf16 path exercising the (16, 128) native packed tile rounding.
    x_bf = jax.random.normal(jax.random.PRNGKey(2), (4, 6, 128), dtype=jnp.bfloat16)
    y_bf = dsigmoid(x_bf)
    jax.block_until_ready(y_bf)
    assert y_bf.shape == x_bf.shape and y_bf.dtype == x_bf.dtype
    assert jnp.allclose(y_bf.astype(jnp.float32),
                        _dsigmoid_jnp(x_bf).astype(jnp.float32),
                        atol=2e-2, rtol=2e-2), "mismatch vs reference (bf16 path)"

    # Awkward element count (105 elements) -> fused-XLA fallback path.
    x2 = jax.random.normal(jax.random.PRNGKey(3), (3, 5, 7), dtype=jnp.float32)
    y2 = dsigmoid(x2)
    jax.block_until_ready(y2)
    assert y2.shape == x2.shape and y2.dtype == x2.dtype
    assert jnp.allclose(y2, _dsigmoid_jnp(x2), atol=1e-5, rtol=1e-5), \
        "mismatch vs reference (fallback path)"

    print("KERNEL_OK")
</pallas_src>

<mosaic_0001>
module attributes {stable_mosaic.version = 11 : i64} {
  func.func @_dsigmoid_kernel(%arg0: i32, %arg1: memref<8x128xf32, #tpu.memory_space<vmem>>, %arg2: memref<8x128xf32, #tpu.memory_space<vmem>>) attributes {dimension_semantics = [#tpu.dimension_semantics<parallel>], iteration_bounds = array<i64: 2>, scalar_prefetch = 0 : i64, scratch_operands = 0 : i64, tpu.core_type = #tpu.core_type<tc>, window_params = [{transform_indices = @transform_0, window_bounds = array<i64: 8, 128>}, {transform_indices = @transform_1, window_bounds = array<i64: 8, 128>}]} {
    %c0 = arith.constant 0 : index
    %c0_0 = arith.constant 0 : index
    %0 = vector.load %arg1[%c0, %c0_0] : memref<8x128xf32, #tpu.memory_space<vmem>>, vector<8x128xf32>
    %cst = arith.constant 1.000000e+01 : f32
    %1 = vector.broadcast %cst : f32 to vector<8x128xf32>
    %2 = arith.mulf %1, %0 : vector<8x128xf32>
    %3 = arith.negf %2 : vector<8x128xf32>
    %4 = math.exp %3 : vector<8x128xf32>
    %cst_1 = arith.constant 1.000000e+00 : f32
    %5 = vector.broadcast %cst_1 : f32 to vector<8x128xf32>
    %6 = arith.addf %5, %4 : vector<8x128xf32>
    %7 = arith.divf %5, %6 : vector<8x128xf32>
    %cst_2 = arith.constant 1.000000e+01 : f32
    %8 = vector.broadcast %cst_2 : f32 to vector<8x128xf32>
    %9 = arith.mulf %8, %7 : vector<8x128xf32>
    %cst_3 = arith.constant 1.000000e+00 : f32
    %10 = vector.broadcast %cst_3 : f32 to vector<8x128xf32>
    %11 = arith.subf %10, %7 : vector<8x128xf32>
    %12 = arith.mulf %9, %11 : vector<8x128xf32>
    %c0_4 = arith.constant 0 : index
    %c0_5 = arith.constant 0 : index
    %13 = vector.load %arg2[%c0_4, %c0_5] : memref<8x128xf32, #tpu.memory_space<vmem>>, vector<8x128xf32>
    tpu.vector_store %arg2[%c0_4, %c0_5], %12 {strides = array<i32>} : memref<8x128xf32, #tpu.memory_space<vmem>>, vector<8x128xf32>,
    return
  }
  func.func @transform_0(%arg0: i32) -> (i32, i32) {
    %c0_i32 = arith.constant 0 : i32
    %c0_i32_0 = arith.constant 0 : i32
    return %arg0, %c0_i32 : i32, i32
  }
  func.func @transform_1(%arg0: i32) -> (i32, i32) {
    %c0_i32 = arith.constant 0 : i32
    %c0_i32_0 = arith.constant 0 : i32
    return %arg0, %c0_i32 : i32, i32
  }
}

</mosaic_0001>

<bundles_post_ra>
// kernel: tpu_custom_call.1
= control target key start
LH: loop header
LB: loop body
LE: loop exit
PB: predicated region body
PF: predicated region fallthrough
CT: control target
= control target key end

     0   :  { %6 = vsyncpa [#allocation3], 0  ;;  %s538_s0 = inlined_call_operand.hbm [shape: f32[16,128], index: 0, kind: input, shape index: {}]   ;;  %s539_s1 = inlined_call_operand.hbm [shape: f32[16,128], index: 1, kind: output, shape index: {}]  }
   0x1   :  { %8 = vsyncpa [#allocation3 + $0x1], 0 }
   0x2   :  { %9 = vsyncpa [#allocation4], 0 }
   0x3   :  { %11 = vsyncpa [#allocation4 + $0x1], 0  ;;  %s397_s6 = smov 0   ;;  %s399_s7 = smov 0  }
   0x4   :  { %s401_s8 = smov 0   ;;  %s403_s9 = smov 0  }
   0x5 LB: > { %s418_s10 = sadd.s32 4294967295, %s383_s9   ;;  %s228_s11 = sadd.s32 4294967294, %s383_s9   ;;  %s383_s9 = sphi %s403_s9, %s556_s9   ;;  %s379_s8 = sphi %s401_s8, %s555_s8   ;;  %s375_s7 = sphi %s399_s7, %s554_s7   ;;  %s371_s6 = sphi %s397_s6, %s553_s6  }
   0x6   : > { %s422_s12 = sadd.s32 1, %s383_s9   ;;  %s24_s13 = sadd.s32 1, %s379_s8 }
   0x7   : > { %s21_s14 = ssub.s32 %s383_s9, %s422_s12  ;;  %p31_p0 = scmp.ne.s32.totalorder %s379_s8, %s375_s7 }
   0x8   : > { %p22_p1 = scmp.eq.s32.totalorder %s21_s14, 0  ;;  %p32_p2 = scmp.eq.s32.totalorder %s383_s9, 0 }
   0x9   : > { %p37_p3 = scmp.ne.s32.totalorder %s375_s7, %s371_s6  ;;  %p38_p4 = scmp.eq.s32.totalorder %s418_s10, 0 }
   0xa   : > { %s434_s15 = scalar_select %p22_p1, %s379_s8, %s24_s13  }
   0xb   : > { %p436_p5 = por %p32_p2, %p31_p0  ;;  %p440_p6 = por %p38_p4, %p37_p3 }
   0xc   : > { %p61_p7 = scmp.eq.s32.totalorder %s418_s10, 1  ;;  %p67_p8 = scmp.eq.s32.totalorder %s228_s11, 1 }
   0xd   : > { %s543_s17 = scalar_select %p440_p6, 1, 0 }
   0xe   : > { %p253_p10 = scmp.lt.s32.totalorder %s383_s9, 2  ;;  %p447_p11 = por %p61_p7, %p31_p0 }
   0xf   : > { %p451_p12 = por %p67_p8, %p37_p3  ;;  %s87_s20 = sand.u32 1, %s379_s8  }
  0x10   : > { %s544_s18 = scalar_select %p447_p11, 1, 0 }
  0x11   : > { %s545_s19 = scalar_select %p451_p12, 1, 0 }
  0x12   : > { %s232_s21 = sshll.u32 %s383_s9, 7  ;;  %s231_s22 = sshll.u32 %s87_s20, 3 }
  0x13   : > { %s460_s25 = scalar_lea.hbm %s538_s0, %s232_s21  ;;  %s91_s26 = scalar_lea.vmem [#allocation2], %s231_s22 }
  0x14   : > { %s98_s27 = sshll.u32 %s91_s26, 4  ;;  %p464_p13 = pnand %p253_p10, %p436_p5  ;;  %s468_s27 = int_to_ptr.vmem [resolvable:$true] %s98_s27 }
  0x15   : > { %s88_s29 = scalar_lea.sflag [#allocation3], %s87_s20  ;;  %s291_s30 = scalar_lea.hbm %s460_s25, 128 }
  0x16   : > { %p292_p2 = scmp.ne.s32.totalorder %s460_s25, %s291_s30  ;;  %p293_p3 = pneg %p464_p13 }
  0x17   : > { %s296_s4 = scalar_lea.hbm %s538_s0, 256  ;;  %p297_p5 = scmp.lt.s32.totalorder %s460_s25, %s538_s0 }
  0x18   : > { %p294_p4 = pnand %p293_p3, %p292_p2  ;;  %p298_p8 = scmp.lt.s32.totalorder %s296_s4, %s291_s30 }
  0x1a   : > { %p295_p7 = pneg %p294_p4  ;;  %p299_p10 = por %p298_p8, %p297_p5 }
  0x1c   : > { %p300_p9 = pnand %p299_p10, %p295_p7 }
  0x1e   : > { %303 = shalt.err (!%p300_p9)
}
  0x1f   : > { %s304_s13 = scalar_lea.vmem %s468_s27, 128  ;;  %s385_s14 = smov [#allocation2]  }
  0x20   : > { %p305_p0 = scmp.ne.s32.totalorder %s468_s27, %s304_s13  ;;  %s309_s16 = sshll.u32 %s385_s14, 4  ;;  %s310_s16 = int_to_ptr.vmem [resolvable:$false] %s309_s16 }
  0x21   : > { %s311_s20 = scalar_lea.vmem %s310_s16, 256  ;;  %p312_p4 = scmp.lt.s32.totalorder %s468_s27, %s310_s16 }
  0x22   : > { %p307_p1 = pnand %p305_p0, %p293_p3  ;;  %p313_p12 = scmp.lt.s32.totalorder %s311_s20, %s304_s13 }
  0x24   : > { %p308_p2 = pneg %p307_p1  ;;  %p314_p11 = por %p313_p12, %p312_p4 }
  0x26   : > { %p315_p6 = pnand %p314_p11, %p308_p2 }
  0x28   : > { %318 = shalt.err (!%p315_p6)
}
  0x29   : > { %248 = dma.hbm_to_vmem [thread:$0]  (!%p464_p13), %s460_s25, 128, %s468_s27, %s88_s29  }
  0x2a   : > { %p547_p9 = scmp.lt.s32.totalorder %s383_s9, 3  ;;  %p548_p7 = scmp.ge.s32.totalorder %s383_s9, 1 }
  0x2c   : > { %p104_p0 = pnand %p548_p7, %p547_p9 }
  0x2d   : > { %s495_s21 = sand.u32 (!%p104_p0), 1, %s375_s7   ;;  %p549_p6 = scmp.ne.s32.totalorder (!%p104_p0), %s543_s17, 0 }
  0x2e   : > { %107 = sbr.rel (%p104_p0) target bundleno = 104 (0x68), region = 24  ;;  %s234_s22 = sshll.u32 (!%p104_p0), %s495_s21, 3 }
  0x2f   : > { %s110_s23 = scalar_lea.sflag (!%p104_p0), [#allocation3], %s495_s21  ;;  %s113_s24 = scalar_lea.vmem (!%p104_p0), [#allocation2], %s234_s22 }
  0x33   : > { %362 = dma.done.wait (%p549_p6), %s110_s23, 128  }
  0x34   : > { %364 = vsyncadd (%p549_p6), %s110_s23, 4294967168  ;;  %v132_v0 = vld [vmem:[%s113_s24] sm:$0xff]  ;;  %s131_s25 = scalar_lea.vmem [#allocation5], %s234_s22  ;;  %s238_s27 = sshll.u32 %s418_s10, 7 }
  0x35   : > { %v236_v1 = vmul.f32 -10.0, %v132_v0  ;;  %s158_s26 = sshll.u32 %s131_s25, 4  ;;  %s156_s29 = scalar_lea.hbm %s539_s1, %s238_s27  ;;  %s159_s26 = int_to_ptr.vmem [resolvable:$true] %s158_s26 }
  0x36   : > { %s145_s30 = scalar_lea.sflag [#allocation4], %s495_s21  ;;  %s319_s2 = scalar_lea.vmem %s159_s26, 128 }
  0x37   : > { %v135_v2 = vmul.f32 1.442695, %v236_v1  ;;  %p320_p11 = scmp.ne.s32.totalorder %s159_s26, %s319_s2  ;;  %p550_p12 = scmp.ne.s32.totalorder %s544_s18, 0 }
  0x38   : > { %s386_s3 = smov [#allocation5]  }
  0x39   : > { %287 = vpow2.f32 %v135_v2  ;;  %p321_p13 = pnand %p320_p11, %p550_p12  ;;  %s323_s4 = sshll.u32 %s386_s3, 4  ;;  %s324_s4 = int_to_ptr.vmem [resolvable:$false] %s323_s4 }
  0x3a   : > { %s325_s5 = scalar_lea.vmem %s324_s4, 256  ;;  %p326_p3 = scmp.lt.s32.totalorder %s159_s26, %s324_s4 }
  0x3b   : > { %p322_p1 = pneg %p321_p13  ;;  %p327_p5 = scmp.lt.s32.totalorder %s325_s5, %s319_s2 }
  0x3d   : > { %p328_p8 = por %p327_p5, %p326_p3 }
  0x3f   : > { %p329_p10 = pnand %p328_p8, %p322_p1 }
  0x46   : > { %v288_v3 = vpop.eup %287 }
  0x47   : > { %v137_v4 = vadd.f32 1.0, %v288_v3 }
  0x49   : > { %289 = vrcp.f32 %v137_v4 }
  0x56   : > { %v290_v5 = vpop.eup %289 }
  0x57   : > { %v140_v6 = vmul.f32 10.0, %v290_v5  ;;  %v141_v7 = vsub.f32 1.0, %v290_v5 }
  0x59   : > { %v142_v8 = vmul.f32 %v141_v7, %v140_v6 }
  0x5b   : > { %143 = vst [vmem:[%s131_s25] sm:$0xff] %v142_v8 }
  0x5c   : > { %332 = shalt.err (!%p329_p10)
}
  0x5d   : > { %s333_s10 = scalar_lea.hbm %s156_s29, 128  ;;  %s337_s14 = scalar_lea.hbm %s539_s1, 256 }
  0x5e   : > { %p334_p2 = scmp.ne.s32.totalorder %s156_s29, %s333_s10  ;;  %p338_p7 = scmp.lt.s32.totalorder %s156_s29, %s539_s1 }
  0x5f   : > { %p339_p0 = scmp.lt.s32.totalorder %s337_s14, %s333_s10 }
  0x60   : > { %p335_p4 = pnand %p334_p2, %p550_p12 }
  0x61   : > { %p340_p6 = por %p339_p0, %p338_p7 }
  0x62   : > { %p336_p9 = pneg %p335_p4 }
  0x64   : > { %p341_p11 = pnand %p340_p6, %p336_p9 }
  0x66   : > { %344 = shalt.err (!%p341_p11)
}
  0x67   : > { %243 = dma.vmem_to_hbm [thread:$0]  (%p550_p12), %s159_s26, 128, %s156_s29, %s145_s30  }
  0x68 PF: > { %s170_s21 = sand.u32 1, %s371_s6   ;;  %p551_p13 = scmp.ne.s32.totalorder %s545_s19, 0 }
  0x69   : > { %p552_p1 = scmp.ge.s32.totalorder %s383_s9, 2  ;;  %s171_s22 = scalar_lea.sflag [#allocation4], %s170_s21 }
  0x6b   : > { %p250_p3 = pnand %p552_p1, %p551_p13 }
  0x6d   : > { %p251_p5 = pneg %p250_p3 }
  0x6f   : > { %366 = dma.done.wait (%p251_p5), %s171_s22, 128  }
  0x70   : > { %368 = vsyncadd (%p251_p5), %s171_s22, 4294967168  ;;  %p14_p8 = scmp.ge.s32.totalorder %s422_s12, 4   ;;  %s553_s6 = smov %s375_s7 }
  0x71   : > { %s554_s7 = smov %s379_s8  ;;  %s555_s8 = smov %s434_s15 }
  0x72   : > { %s556_s9 = smov %s422_s12  ;;  %16 = sbr.rel (!%p14_p8) target bundleno = 5 (0x5), region = 69 }
  0x77   :  { %176 = vsyncpa [#allocation3], 1 }
  0x78   :  { %178 = vsyncpa [#allocation3 + $0x1], 1 }
  0x79   :  { %179 = vsyncpa [#allocation4], 1 }
  0x7a   :  { %181 = vsyncpa [#allocation4 + $0x1], 1 }

</bundles_post_ra>
